<compile_context>
chip_gen: v6e
topology: v6e:2x2x1
jax: 0.10.0
libtpu: 0.0.40
codegen_flags: <defaults>
</compile_context>

<pallas_src>
import math
import functools

import jax
import jax.numpy as jnp
import numpy as np
from jax.experimental import pallas as pl
from jax.experimental.pallas import tpu as pltpu

EPS = 1e-5


def _cdiv(a, b):
    return -(-a // b)


def _device_vmem_bytes():
    """Per-TensorCore VMEM capacity (v5e/v6e: 128 MiB, v7x: 64 MiB); conservative fallback."""
    try:
        info = pltpu.get_tpu_info()
        v = getattr(info, "vmem_capacity_bytes", None)
        if v:
            return int(v)
    except Exception:
        pass
    return 64 * 1024 * 1024


def block_kernel(x_ref, ln1w_ref, ln1b_ref, wqkvT_ref, bqkvT_ref,
                 wproj_ref, bproj_ref, ln2w_ref, ln2b_ref,
                 w1_ref, b1_ref, w2_ref, b2_ref, o_ref,
                 *, n_head, head_dim, res_scale):
    H, hd = n_head, head_dim
    C = H * hd
    x = x_ref[0].astype(jnp.float32)                        # (Tt, C)

    def layernorm(h, w_ref, b_ref):
        mu = jnp.mean(h, axis=-1, keepdims=True)
        var = jnp.mean((h - mu) ** 2, axis=-1, keepdims=True)
        return (h - mu) * jax.lax.rsqrt(var + EPS) * w_ref[...] + b_ref[...]

    # ---------------- attention branch (HxH causal softmax over HEADS, per token) --------
    h1 = layernorm(x, ln1w_ref, ln1b_ref)
    # (3C, Tt) = wqkv^T (3C, C) @ h1^T (C, Tt); rows are head-major [q | k | v] blocks and
    # 1/sqrt(hd) was pre-folded into the q rows/bias in the wrapper.
    qkv_t = jnp.dot(wqkvT_ref[...], h1.T.astype(jnp.bfloat16),
                    preferred_element_type=jnp.float32) + bqkvT_ref[...]

    q_t = [qkv_t[i * hd:(i + 1) * hd, :] for i in range(H)]          # (hd, Tt), aligned
    k_t = [qkv_t[C + i * hd: C + (i + 1) * hd, :] for i in range(H)]
    v_t = [qkv_t[2 * C + i * hd: 2 * C + (i + 1) * hd, :] for i in range(H)]

    out_heads = []
    for i in range(H):
        # causal over heads: only key heads j <= i contribute.  Every temporary is
        # (*, Tt) lane-dense; the softmax reduces over a tiny sublane axis.
        s = jnp.concatenate(
            [jnp.sum(q_t[i] * k_t[j], axis=0, keepdims=True) for j in range(i + 1)],
            axis=0)                                        # (i+1, Tt)
        m = jnp.max(s, axis=0, keepdims=True)              # (1, Tt)
        p = jnp.exp(s - m)                                 # lane-dense EUP
        l = jnp.sum(p, axis=0, keepdims=True)
        pn = p * pl.reciprocal(l)                          # exact reciprocal (EUP, ~free)
        o_i = pn[0:1, :] * v_t[0]
        for j in range(1, i + 1):
            o_i = o_i + pn[j:j + 1, :] * v_t[j]            # (hd, Tt)
        out_heads.append(o_i)
    attn_t = jnp.concatenate(out_heads, axis=0)            # (C, Tt), head-major rows

    # back to the natural (Tt, C) layout once, then ONE fused output projection.
    attn = attn_t.T.astype(jnp.bfloat16)                   # (Tt, C)
    y = jnp.dot(attn, wproj_ref[...],
                preferred_element_type=jnp.float32) + bproj_ref[...]
    x1 = x + res_scale * y

    # ---------------- MLP branch (GLU with exact erf-GELU) ----------------
    h2 = layernorm(x1, ln2w_ref, ln2b_ref)
    u = jnp.dot(h2.astype(jnp.bfloat16), w1_ref[...],
                preferred_element_type=jnp.float32) + b1_ref[...]     # (Tt, 2C)
    a = u[:, :C]
    gate = u[:, C:]
    g = 0.5 * a * (1.0 + jax.lax.erf(a * (1.0 / math.sqrt(2.0)))) * gate
    mlp = jnp.dot(g.astype(jnp.bfloat16), w2_ref[...],
                  preferred_element_type=jnp.float32) + b2_ref[...]

    o_ref[0] = (x1 + res_scale * mlp).astype(o_ref.dtype)


def _param_spec(p):
    r = p.ndim
    idx = lambda b, t, r=r: (0,) * r
    try:
        # constant index_map -> never re-DMA'd; single-buffer to halve resident weight VMEM.
        return pl.BlockSpec(p.shape, idx, pipeline_mode=pl.Buffered(1))
    except TypeError:                       # older API without pipeline_mode
        return pl.BlockSpec(p.shape, idx)


def make_params(cfg, key):
    C = cfg['embed_dim']
    ks = jax.random.split(key, 12)

    def w(k, shape, scale=0.02):
        return (scale * jax.random.normal(k, shape)).astype(jnp.float32)

    return dict(
        ln1_w=(1.0 + w(ks[0], (1, C), 0.1)).astype(jnp.float32),
        ln1_b=w(ks[1], (1, C), 0.1),
        wqkv=w(ks[2], (C, 3 * C)),
        bqkv=w(ks[3], (1, 3 * C)),
        wproj=w(ks[4], (C, C)),
        bproj=w(ks[5], (1, C)),
        ln2_w=(1.0 + w(ks[6], (1, C), 0.1)).astype(jnp.float32),
        ln2_b=w(ks[7], (1, C), 0.1),
        w1=w(ks[8], (C, 2 * C)),
        b1=w(ks[9], (1, 2 * C)),
        w2=w(ks[10], (C, C)),
        b2=w(ks[11], (1, C)),
    )


def block_forward(x, params, cfg, *, tile_t=None):
    B, T, C = x.shape
    H = cfg['n_head']
    hd = C // H
    assert H * hd == C
    res_scale = 1.0 / math.sqrt(2 * cfg['n_layer'])

    # ---- parameter plumbing (trace-time, free): permute qkv columns to head-major
    #      [q_h0..q_h{H-1} | k heads | v heads], fold 1/sqrt(hd) into the q block, and
    #      store transposed (3C, C) for the in-kernel (3C,C)@(C,Tt) matmul.  Big weights bf16.
    order = np.array([h * 3 * hd + part * hd + e
                      for part in range(3) for h in range(H) for e in range(hd)],
                     dtype=np.int32)
    scale_vec = np.ones((3 * C,), dtype=np.float32)
    scale_vec[:C] = 1.0 / math.sqrt(hd)
    scale_vec = jnp.asarray(scale_vec)
    wqkv_t = (params['wqkv'][:, order] * scale_vec[None, :]).T.astype(jnp.bfloat16)  # (3C, C)
    bqkv_t = (params['bqkv'][0, order] * scale_vec).reshape(3 * C, 1)                # (3C, 1)

    plist = [params['ln1_w'], params['ln1_b'], wqkv_t, bqkv_t,
             params['wproj'].astype(jnp.bfloat16), params['bproj'],
             params['ln2_w'], params['ln2_b'],
             params['w1'].astype(jnp.bfloat16), params['b1'],
             params['w2'].astype(jnp.bfloat16), params['b2']]

    # ---- VMEM-aware tile selection (v5e/v6e: 128 MiB, v7x: 64 MiB per TensorCore) ----
    weight_bytes = 2 * 7 * C * C + 4 * 16 * C   # single-buffered bf16 weights + f32 biases/LN
    per_row_bytes = 96 * C                      # f32 working set / token row (dbl-buffered I/O,
                                                # qkv_t / attn / mlp intermediates, slack)
    vmem_cap = _device_vmem_bytes()
    if tile_t is None:
        tile_t = 512
        while tile_t > 8 and weight_bytes + tile_t * per_row_bytes > int(0.7 * vmem_cap):
            tile_t //= 2
    tile_t = min(tile_t, T)
    if tile_t != T:
        tile_t = max(8, (tile_t // 8) * 8)      # keep sublane alignment for partial tiling
    # keep enough grid steps for megacore (v7x has 2 TensorCores) and DMA lookahead
    while tile_t >= 16 and B * _cdiv(T, tile_t) < 4:
        tile_t = max(8, (tile_t // 2) // 8 * 8)
    n_t = _cdiv(T, tile_t)

    vmem_limit = int(min(0.85 * vmem_cap,
                         max(32 << 20, weight_bytes + tile_t * per_row_bytes + (8 << 20))))

    cost = pl.CostEstimate(
        flops=2 * B * T * 7 * C * C + 4 * B * T * H * C,
        transcendentals=B * T * (C + (H * (H + 1)) // 2 + 4),
        bytes_accessed=2 * B * T * C * 4 + weight_bytes)

    kernel = functools.partial(block_kernel, n_head=H, head_dim=hd, res_scale=res_scale)

    # NOTE: every op in this block is strictly per-token, so T can be tiled freely and a
    # partial last tile only computes on (and then masks out) garbage rows.
    # TODO(synk): for embed_dim not a multiple of 128, pad C in the wrapper (with a masked
    # LayerNorm) to keep the output block lane-dense; skipped here to keep exact semantics.
    return pl.pallas_call(
        kernel,
        out_shape=jax.ShapeDtypeStruct((B, T, C), x.dtype),
        grid=(B, n_t),
        in_specs=[pl.BlockSpec((1, tile_t, C), lambda b, t: (b, t, 0))]
                 + [_param_spec(p) for p in plist],
        out_specs=pl.BlockSpec((1, tile_t, C), lambda b, t: (b, t, 0)),
        compiler_params=pltpu.CompilerParams(
            dimension_semantics=("parallel", "parallel"),
            vmem_limit_bytes=vmem_limit),
        cost_estimate=cost,
    )(x, *plist)


def ref_block(x, params, cfg):
    """Pure-JAX reference mirroring the PyTorch forward exactly (f32)."""
    C = cfg['embed_dim']
    H = cfg['n_head']
    hd = C // H
    B, T, _ = x.shape
    res_scale = 1.0 / math.sqrt(2 * cfg['n_layer'])

    def ln(h, w, b):
        mu = h.mean(-1, keepdims=True)
        var = ((h - mu) ** 2).mean(-1, keepdims=True)
        return (h - mu) / jnp.sqrt(var + EPS) * w[0] + b[0]

    h1 = ln(x, params['ln1_w'], params['ln1_b'])
    qkv = (h1 @ params['wqkv'] + params['bqkv'][0]).reshape(B, T, H, 3 * hd)
    q, k, v = qkv[..., :hd], qkv[..., hd:2 * hd], qkv[..., 2 * hd:]
    scores = jnp.einsum('btie,btje->btij', q, k) / math.sqrt(hd)
    mask = jnp.tril(jnp.ones((H, H), dtype=bool))
    scores = jnp.where(mask, scores, -jnp.inf)
    p = jax.nn.softmax(scores, axis=-1)
    attn = jnp.einsum('btij,btje->btie', p, v).reshape(B, T, C)
    y = attn @ params['wproj'] + params['bproj'][0]
    x1 = x + res_scale * y

    h2 = ln(x1, params['ln2_w'], params['ln2_b'])
    u = h2 @ params['w1'] + params['b1'][0]
    a, gate = u[..., :C], u[..., C:]
    g = 0.5 * a * (1.0 + jax.lax.erf(a / math.sqrt(2.0))) * gate
    m = g @ params['w2'] + params['b2'][0]
    return x1 + res_scale * m


if __name__ == "__main__":
    cfg = dict(embed_dim=32, n_head=4, n_layer=2, block_size=8,
               bias=True, dropout=0.0)
    B, T = 2, 8

    key = jax.random.PRNGKey(0)
    kx, kp = jax.random.split(key)
    x = jax.random.normal(kx, (B, T, cfg['embed_dim']), dtype=jnp.float32)
    params = make_params(cfg, kp)

    out = block_forward(x, params, cfg)
    out = jax.block_until_ready(out)

    ref = ref_block(x, params, cfg)
    # bf16 matmul inputs (f32 accumulation) -> tolerance relaxed vs the f32 reference.
    np.testing.assert_allclose(np.asarray(out), np.asarray(ref),
                               atol=2e-2, rtol=2e-2)
    print("KERNEL_OK")
</pallas_src>

<mosaic_0001>
module attributes {stable_mosaic.version = 11 : i64} {
  func.func @block_kernel(%arg0: i32, %arg1: i32, %arg2: memref<1x8x32xf32, #tpu.memory_space<vmem>>, %arg3: memref<1x32xf32, #tpu.memory_space<vmem>>, %arg4: memref<1x32xf32, #tpu.memory_space<vmem>>, %arg5: memref<96x32xbf16, #tpu.memory_space<vmem>>, %arg6: memref<96x1xf32, #tpu.memory_space<vmem>>, %arg7: memref<32x32xbf16, #tpu.memory_space<vmem>>, %arg8: memref<1x32xf32, #tpu.memory_space<vmem>>, %arg9: memref<1x32xf32, #tpu.memory_space<vmem>>, %arg10: memref<1x32xf32, #tpu.memory_space<vmem>>, %arg11: memref<32x64xbf16, #tpu.memory_space<vmem>>, %arg12: memref<1x64xf32, #tpu.memory_space<vmem>>, %arg13: memref<32x32xbf16, #tpu.memory_space<vmem>>, %arg14: memref<1x32xf32, #tpu.memory_space<vmem>>, %arg15: memref<1x8x32xf32, #tpu.memory_space<vmem>>) attributes {dimension_semantics = [#tpu.dimension_semantics<parallel>, #tpu.dimension_semantics<parallel>], iteration_bounds = array<i64: 2, 1>, scalar_prefetch = 0 : i64, scratch_operands = 0 : i64, tpu.core_type = #tpu.core_type<tc>, window_params = [{transform_indices = @transform_0, window_bounds = array<i64: 1, 8, 32>}, {pipeline_mode = #tpu.pipeline_mode<synchronous>, transform_indices = @transform_1, window_bounds = array<i64: 1, 32>}, {pipeline_mode = #tpu.pipeline_mode<synchronous>, transform_indices = @transform_2, window_bounds = array<i64: 1, 32>}, {pipeline_mode = #tpu.pipeline_mode<synchronous>, transform_indices = @transform_3, window_bounds = array<i64: 96, 32>}, {pipeline_mode = #tpu.pipeline_mode<synchronous>, transform_indices = @transform_4, window_bounds = array<i64: 96, 1>}, {pipeline_mode = #tpu.pipeline_mode<synchronous>, transform_indices = @transform_5, window_bounds = array<i64: 32, 32>}, {pipeline_mode = #tpu.pipeline_mode<synchronous>, transform_indices = @transform_6, window_bounds = array<i64: 1, 32>}, {pipeline_mode = #tpu.pipeline_mode<synchronous>, transform_indices = @transform_7, window_bounds = array<i64: 1, 32>}, {pipeline_mode = #tpu.pipeline_mode<synchronous>, transform_indices = @transform_8, window_bounds = array<i64: 1, 32>}, {pipeline_mode = #tpu.pipeline_mode<synchronous>, transform_indices = @transform_9, window_bounds = array<i64: 32, 64>}, {pipeline_mode = #tpu.pipeline_mode<synchronous>, transform_indices = @transform_10, window_bounds = array<i64: 1, 64>}, {pipeline_mode = #tpu.pipeline_mode<synchronous>, transform_indices = @transform_11, window_bounds = array<i64: 32, 32>}, {pipeline_mode = #tpu.pipeline_mode<synchronous>, transform_indices = @transform_12, window_bounds = array<i64: 1, 32>}, {transform_indices = @transform_13, window_bounds = array<i64: 1, 8, 32>}]} {
    %c0 = arith.constant 0 : index
    %c0_0 = arith.constant 0 : index
    %c0_1 = arith.constant 0 : index
    %0 = vector.load %arg2[%c0, %c0_0, %c0_1] : memref<1x8x32xf32, #tpu.memory_space<vmem>>, vector<1x8x32xf32>
    %1 = vector.shape_cast %0 : vector<1x8x32xf32> to vector<8x32xf32>
    %cst = arith.constant dense<0.000000e+00> : vector<8xf32>
    %2 = vector.multi_reduction <add>, %1, %cst [1] : vector<8x32xf32> to vector<8xf32>
    %3 = vector.shape_cast %2 : vector<8xf32> to vector<8x1xf32>
    %cst_2 = arith.constant 3.200000e+01 : f32
    %4 = vector.broadcast %cst_2 : f32 to vector<8x1xf32>
    %5 = arith.divf %3, %4 : vector<8x1xf32>
    %6 = vector.broadcast %5 : vector<8x1xf32> to vector<8x32xf32>
    %7 = arith.subf %1, %6 : vector<8x32xf32>
    %8 = arith.mulf %7, %7 : vector<8x32xf32>
    %cst_3 = arith.constant dense<0.000000e+00> : vector<8xf32>
    %9 = vector.multi_reduction <add>, %8, %cst_3 [1] : vector<8x32xf32> to vector<8xf32>
    %10 = vector.shape_cast %9 : vector<8xf32> to vector<8x1xf32>
    %cst_4 = arith.constant 3.200000e+01 : f32
    %11 = vector.broadcast %cst_4 : f32 to vector<8x1xf32>
    %12 = arith.divf %10, %11 : vector<8x1xf32>
    %13 = vector.broadcast %5 : vector<8x1xf32> to vector<8x32xf32>
    %14 = arith.subf %1, %13 : vector<8x32xf32>
    %cst_5 = arith.constant 9.99999974E-6 : f32
    %15 = vector.broadcast %cst_5 : f32 to vector<8x1xf32>
    %16 = arith.addf %12, %15 : vector<8x1xf32>
    %17 = math.rsqrt %16 : vector<8x1xf32>
    %18 = vector.broadcast %17 : vector<8x1xf32> to vector<8x32xf32>
    %19 = arith.mulf %14, %18 : vector<8x32xf32>
    %c0_6 = arith.constant 0 : index
    %c0_7 = arith.constant 0 : index
    %20 = vector.load %arg3[%c0_6, %c0_7] : memref<1x32xf32, #tpu.memory_space<vmem>>, vector<1x32xf32>
    %21 = vector.broadcast %20 : vector<1x32xf32> to vector<8x32xf32>
    %22 = arith.mulf %19, %21 : vector<8x32xf32>
    %c0_8 = arith.constant 0 : index
    %c0_9 = arith.constant 0 : index
    %23 = vector.load %arg4[%c0_8, %c0_9] : memref<1x32xf32, #tpu.memory_space<vmem>>, vector<1x32xf32>
    %24 = vector.broadcast %23 : vector<1x32xf32> to vector<8x32xf32>
    %25 = arith.addf %22, %24 : vector<8x32xf32>
    %c0_10 = arith.constant 0 : index
    %c0_11 = arith.constant 0 : index
    %26 = vector.load %arg5[%c0_10, %c0_11] : memref<96x32xbf16, #tpu.memory_space<vmem>>, vector<96x32xbf16>
    %27 = tpu.transpose %25, [1, 0] : vector<8x32xf32> -> vector<32x8xf32>
    %28 = arith.truncf %27 : vector<32x8xf32> to vector<32x8xbf16>
    %cst_12 = arith.constant dense<0.000000e+00> : vector<96x8xf32>
    %29 = tpu.matmul %26, %28, %cst_12 {dimension_numbers = #tpu.dot_dimension_numbers<[1], [0], [0], [1], [0, 0, 1, 1], [], []>} : vector<96x32xbf16>, vector<32x8xbf16>, vector<96x8xf32> -> vector<96x8xf32>
    %c0_13 = arith.constant 0 : index
    %c0_14 = arith.constant 0 : index
    %30 = vector.load %arg6[%c0_13, %c0_14] : memref<96x1xf32, #tpu.memory_space<vmem>>, vector<96x1xf32>
    %31 = vector.broadcast %30 : vector<96x1xf32> to vector<96x8xf32>
    %32 = arith.addf %29, %31 : vector<96x8xf32>
    %33 = vector.extract_strided_slice %32 {offsets = [0, 0], sizes = [8, 8], strides = [1, 1]} : vector<96x8xf32> to vector<8x8xf32>
    %34 = vector.extract_strided_slice %32 {offsets = [8, 0], sizes = [8, 8], strides = [1, 1]} : vector<96x8xf32> to vector<8x8xf32>
    %35 = vector.extract_strided_slice %32 {offsets = [16, 0], sizes = [8, 8], strides = [1, 1]} : vector<96x8xf32> to vector<8x8xf32>
    %36 = vector.extract_strided_slice %32 {offsets = [24, 0], sizes = [8, 8], strides = [1, 1]} : vector<96x8xf32> to vector<8x8xf32>
    %37 = vector.extract_strided_slice %32 {offsets = [32, 0], sizes = [8, 8], strides = [1, 1]} : vector<96x8xf32> to vector<8x8xf32>
    %38 = vector.extract_strided_slice %32 {offsets = [40, 0], sizes = [8, 8], strides = [1, 1]} : vector<96x8xf32> to vector<8x8xf32>
    %39 = vector.extract_strided_slice %32 {offsets = [48, 0], sizes = [8, 8], strides = [1, 1]} : vector<96x8xf32> to vector<8x8xf32>
    %40 = vector.extract_strided_slice %32 {offsets = [56, 0], sizes = [8, 8], strides = [1, 1]} : vector<96x8xf32> to vector<8x8xf32>
    %41 = vector.extract_strided_slice %32 {offsets = [64, 0], sizes = [8, 8], strides = [1, 1]} : vector<96x8xf32> to vector<8x8xf32>
    %42 = vector.extract_strided_slice %32 {offsets = [72, 0], sizes = [8, 8], strides = [1, 1]} : vector<96x8xf32> to vector<8x8xf32>
    %43 = vector.extract_strided_slice %32 {offsets = [80, 0], sizes = [8, 8], strides = [1, 1]} : vector<96x8xf32> to vector<8x8xf32>
    %44 = vector.extract_strided_slice %32 {offsets = [88, 0], sizes = [8, 8], strides = [1, 1]} : vector<96x8xf32> to vector<8x8xf32>
    %45 = arith.mulf %33, %37 : vector<8x8xf32>
    %cst_15 = arith.constant dense<0.000000e+00> : vector<8xf32>
    %46 = vector.multi_reduction <add>, %45, %cst_15 [0] : vector<8x8xf32> to vector<8xf32>
    %47 = vector.shape_cast %46 : vector<8xf32> to vector<1x8xf32>
    %cst_16 = arith.constant dense<0xFF800000> : vector<8xf32>
    %48 = vector.multi_reduction <maximumf>, %47, %cst_16 [0] : vector<1x8xf32> to vector<8xf32>
    %49 = vector.shape_cast %48 : vector<8xf32> to vector<1x8xf32>
    %50 = arith.subf %47, %49 : vector<1x8xf32>
    %51 = math.exp %50 : vector<1x8xf32>
    %cst_17 = arith.constant dense<0.000000e+00> : vector<8xf32>
    %52 = vector.multi_reduction <add>, %51, %cst_17 [0] : vector<1x8xf32> to vector<8xf32>
    %53 = vector.shape_cast %52 : vector<8xf32> to vector<1x8xf32>
    %54 = tpu.reciprocal %53 : vector<1x8xf32> -> vector<1x8xf32>
    %55 = arith.mulf %51, %54 : vector<1x8xf32>
    %56 = vector.broadcast %55 : vector<1x8xf32> to vector<8x8xf32>
    %57 = arith.mulf %56, %41 : vector<8x8xf32>
    %58 = arith.mulf %34, %37 : vector<8x8xf32>
    %cst_18 = arith.constant dense<0.000000e+00> : vector<8xf32>
    %59 = vector.multi_reduction <add>, %58, %cst_18 [0] : vector<8x8xf32> to vector<8xf32>
    %60 = vector.shape_cast %59 : vector<8xf32> to vector<1x8xf32>
    %61 = arith.mulf %34, %38 : vector<8x8xf32>
    %cst_19 = arith.constant dense<0.000000e+00> : vector<8xf32>
    %62 = vector.multi_reduction <add>, %61, %cst_19 [0] : vector<8x8xf32> to vector<8xf32>
    %63 = vector.shape_cast %62 : vector<8xf32> to vector<1x8xf32>
    %64 = tpu.concatenate %60, %63 in 0 : vector<1x8xf32>, vector<1x8xf32> -> vector<2x8xf32>
    %cst_20 = arith.constant dense<0xFF800000> : vector<8xf32>
    %65 = vector.multi_reduction <maximumf>, %64, %cst_20 [0] : vector<2x8xf32> to vector<8xf32>
    %66 = vector.shape_cast %65 : vector<8xf32> to vector<1x8xf32>
    %67 = vector.broadcast %66 : vector<1x8xf32> to vector<2x8xf32>
    %68 = arith.subf %64, %67 : vector<2x8xf32>
    %69 = math.exp %68 : vector<2x8xf32>
    %cst_21 = arith.constant dense<0.000000e+00> : vector<8xf32>
    %70 = vector.multi_reduction <add>, %69, %cst_21 [0] : vector<2x8xf32> to vector<8xf32>
    %71 = vector.shape_cast %70 : vector<8xf32> to vector<1x8xf32>
    %72 = tpu.reciprocal %71 : vector<1x8xf32> -> vector<1x8xf32>
    %73 = vector.broadcast %72 : vector<1x8xf32> to vector<2x8xf32>
    %74 = arith.mulf %69, %73 : vector<2x8xf32>
    %75 = vector.extract_strided_slice %74 {offsets = [0, 0], sizes = [1, 8], strides = [1, 1]} : vector<2x8xf32> to vector<1x8xf32>
    %76 = vector.broadcast %75 : vector<1x8xf32> to vector<8x8xf32>
    %77 = arith.mulf %76, %41 : vector<8x8xf32>
    %78 = vector.extract_strided_slice %74 {offsets = [1, 0], sizes = [1, 8], strides = [1, 1]} : vector<2x8xf32> to vector<1x8xf32>
    %79 = vector.broadcast %78 : vector<1x8xf32> to vector<8x8xf32>
    %80 = arith.mulf %79, %42 : vector<8x8xf32>
    %81 = arith.addf %77, %80 : vector<8x8xf32>
    %82 = arith.mulf %35, %37 : vector<8x8xf32>
    %cst_22 = arith.constant dense<0.000000e+00> : vector<8xf32>
    %83 = vector.multi_reduction <add>, %82, %cst_22 [0] : vector<8x8xf32> to vector<8xf32>
    %84 = vector.shape_cast %83 : vector<8xf32> to vector<1x8xf32>
    %85 = arith.mulf %35, %38 : vector<8x8xf32>
    %cst_23 = arith.constant dense<0.000000e+00> : vector<8xf32>
    %86 = vector.multi_reduction <add>, %85, %cst_23 [0] : vector<8x8xf32> to vector<8xf32>
    %87 = vector.shape_cast %86 : vector<8xf32> to vector<1x8xf32>
    %88 = arith.mulf %35, %39 : vector<8x8xf32>
    %cst_24 = arith.constant dense<0.000000e+00> : vector<8xf32>
    %89 = vector.multi_reduction <add>, %88, %cst_24 [0] : vector<8x8xf32> to vector<8xf32>
    %90 = vector.shape_cast %89 : vector<8xf32> to vector<1x8xf32>
    %91 = tpu.concatenate %84, %87, %90 in 0 : vector<1x8xf32>, vector<1x8xf32>, vector<1x8xf32> -> vector<3x8xf32>
    %cst_25 = arith.constant dense<0xFF800000> : vector<8xf32>
    %92 = vector.multi_reduction <maximumf>, %91, %cst_25 [0] : vector<3x8xf32> to vector<8xf32>
    %93 = vector.shape_cast %92 : vector<8xf32> to vector<1x8xf32>
    %94 = vector.broadcast %93 : vector<1x8xf32> to vector<3x8xf32>
    %95 = arith.subf %91, %94 : vector<3x8xf32>
    %96 = math.exp %95 : vector<3x8xf32>
    %cst_26 = arith.constant dense<0.000000e+00> : vector<8xf32>
    %97 = vector.multi_reduction <add>, %96, %cst_26 [0] : vector<3x8xf32> to vector<8xf32>
    %98 = vector.shape_cast %97 : vector<8xf32> to vector<1x8xf32>
    %99 = tpu.reciprocal %98 : vector<1x8xf32> -> vector<1x8xf32>
    %100 = vector.broadcast %99 : vector<1x8xf32> to vector<3x8xf32>
    %101 = arith.mulf %96, %100 : vector<3x8xf32>
    %102 = vector.extract_strided_slice %101 {offsets = [0, 0], sizes = [1, 8], strides = [1, 1]} : vector<3x8xf32> to vector<1x8xf32>
    %103 = vector.broadcast %102 : vector<1x8xf32> to vector<8x8xf32>
    %104 = arith.mulf %103, %41 : vector<8x8xf32>
    %105 = vector.extract_strided_slice %101 {offsets = [1, 0], sizes = [1, 8], strides = [1, 1]} : vector<3x8xf32> to vector<1x8xf32>
    %106 = vector.broadcast %105 : vector<1x8xf32> to vector<8x8xf32>
    %107 = arith.mulf %106, %42 : vector<8x8xf32>
    %108 = arith.addf %104, %107 : vector<8x8xf32>
    %109 = vector.extract_strided_slice %101 {offsets = [2, 0], sizes = [1, 8], strides = [1, 1]} : vector<3x8xf32> to vector<1x8xf32>
    %110 = vector.broadcast %109 : vector<1x8xf32> to vector<8x8xf32>
    %111 = arith.mulf %110, %43 : vector<8x8xf32>
    %112 = arith.addf %108, %111 : vector<8x8xf32>
    %113 = arith.mulf %36, %37 : vector<8x8xf32>
    %cst_27 = arith.constant dense<0.000000e+00> : vector<8xf32>
    %114 = vector.multi_reduction <add>, %113, %cst_27 [0] : vector<8x8xf32> to vector<8xf32>
    %115 = vector.shape_cast %114 : vector<8xf32> to vector<1x8xf32>
    %116 = arith.mulf %36, %38 : vector<8x8xf32>
    %cst_28 = arith.constant dense<0.000000e+00> : vector<8xf32>
    %117 = vector.multi_reduction <add>, %116, %cst_28 [0] : vector<8x8xf32> to vector<8xf32>
    %118 = vector.shape_cast %117 : vector<8xf32> to vector<1x8xf32>
    %119 = arith.mulf %36, %39 : vector<8x8xf32>
    %cst_29 = arith.constant dense<0.000000e+00> : vector<8xf32>
    %120 = vector.multi_reduction <add>, %119, %cst_29 [0] : vector<8x8xf32> to vector<8xf32>
    %121 = vector.shape_cast %120 : vector<8xf32> to vector<1x8xf32>
    %122 = arith.mulf %36, %40 : vector<8x8xf32>
    %cst_30 = arith.constant dense<0.000000e+00> : vector<8xf32>
    %123 = vector.multi_reduction <add>, %122, %cst_30 [0] : vector<8x8xf32> to vector<8xf32>
    %124 = vector.shape_cast %123 : vector<8xf32> to vector<1x8xf32>
    %125 = tpu.concatenate %115, %118, %121, %124 in 0 : vector<1x8xf32>, vector<1x8xf32>, vector<1x8xf32>, vector<1x8xf32> -> vector<4x8xf32>
    %cst_31 = arith.constant dense<0xFF800000> : vector<8xf32>
    %126 = vector.multi_reduction <maximumf>, %125, %cst_31 [0] : vector<4x8xf32> to vector<8xf32>
    %127 = vector.shape_cast %126 : vector<8xf32> to vector<1x8xf32>
    %128 = vector.broadcast %127 : vector<1x8xf32> to vector<4x8xf32>
    %129 = arith.subf %125, %128 : vector<4x8xf32>
    %130 = math.exp %129 : vector<4x8xf32>
    %cst_32 = arith.constant dense<0.000000e+00> : vector<8xf32>
    %131 = vector.multi_reduction <add>, %130, %cst_32 [0] : vector<4x8xf32> to vector<8xf32>
    %132 = vector.shape_cast %131 : vector<8xf32> to vector<1x8xf32>
    %133 = tpu.reciprocal %132 : vector<1x8xf32> -> vector<1x8xf32>
    %134 = vector.broadcast %133 : vector<1x8xf32> to vector<4x8xf32>
    %135 = arith.mulf %130, %134 : vector<4x8xf32>
    %136 = vector.extract_strided_slice %135 {offsets = [0, 0], sizes = [1, 8], strides = [1, 1]} : vector<4x8xf32> to vector<1x8xf32>
    %137 = vector.broadcast %136 : vector<1x8xf32> to vector<8x8xf32>
    %138 = arith.mulf %137, %41 : vector<8x8xf32>
    %139 = vector.extract_strided_slice %135 {offsets = [1, 0], sizes = [1, 8], strides = [1, 1]} : vector<4x8xf32> to vector<1x8xf32>
    %140 = vector.broadcast %139 : vector<1x8xf32> to vector<8x8xf32>
    %141 = arith.mulf %140, %42 : vector<8x8xf32>
    %142 = arith.addf %138, %141 : vector<8x8xf32>
    %143 = vector.extract_strided_slice %135 {offsets = [2, 0], sizes = [1, 8], strides = [1, 1]} : vector<4x8xf32> to vector<1x8xf32>
    %144 = vector.broadcast %143 : vector<1x8xf32> to vector<8x8xf32>
    %145 = arith.mulf %144, %43 : vector<8x8xf32>
    %146 = arith.addf %142, %145 : vector<8x8xf32>
    %147 = vector.extract_strided_slice %135 {offsets = [3, 0], sizes = [1, 8], strides = [1, 1]} : vector<4x8xf32> to vector<1x8xf32>
    %148 = vector.broadcast %147 : vector<1x8xf32> to vector<8x8xf32>
    %149 = arith.mulf %148, %44 : vector<8x8xf32>
    %150 = arith.addf %146, %149 : vector<8x8xf32>
    %151 = tpu.concatenate %57, %81, %112, %150 in 0 : vector<8x8xf32>, vector<8x8xf32>, vector<8x8xf32>, vector<8x8xf32> -> vector<32x8xf32>
    %152 = tpu.transpose %151, [1, 0] : vector<32x8xf32> -> vector<8x32xf32>
    %153 = arith.truncf %152 : vector<8x32xf32> to vector<8x32xbf16>
    %c0_33 = arith.constant 0 : index
    %c0_34 = arith.constant 0 : index
    %154 = vector.load %arg7[%c0_33, %c0_34] : memref<32x32xbf16, #tpu.memory_space<vmem>>, vector<32x32xbf16>
    %cst_35 = arith.constant dense<0.000000e+00> : vector<8x32xf32>
    %155 = tpu.matmul %153, %154, %cst_35 {dimension_numbers = #tpu.dot_dimension_numbers<[1], [0], [0], [1], [0, 0, 1, 1], [], []>} : vector<8x32xbf16>, vector<32x32xbf16>, vector<8x32xf32> -> vector<8x32xf32>
    %c0_36 = arith.constant 0 : index
    %c0_37 = arith.constant 0 : index
    %156 = vector.load %arg8[%c0_36, %c0_37] : memref<1x32xf32, #tpu.memory_space<vmem>>, vector<1x32xf32>
    %157 = vector.broadcast %156 : vector<1x32xf32> to vector<8x32xf32>
    %158 = arith.addf %155, %157 : vector<8x32xf32>
    %cst_38 = arith.constant 5.000000e-01 : f32
    %159 = vector.broadcast %cst_38 : f32 to vector<8x32xf32>
    %160 = arith.mulf %159, %158 : vector<8x32xf32>
    %161 = arith.addf %1, %160 : vector<8x32xf32>
    %cst_39 = arith.constant dense<0.000000e+00> : vector<8xf32>
    %162 = vector.multi_reduction <add>, %161, %cst_39 [1] : vector<8x32xf32> to vector<8xf32>
    %163 = vector.shape_cast %162 : vector<8xf32> to vector<8x1xf32>
    %cst_40 = arith.constant 3.200000e+01 : f32
    %164 = vector.broadcast %cst_40 : f32 to vector<8x1xf32>
    %165 = arith.divf %163, %164 : vector<8x1xf32>
    %166 = vector.broadcast %165 : vector<8x1xf32> to vector<8x32xf32>
    %167 = arith.subf %161, %166 : vector<8x32xf32>
    %168 = arith.mulf %167, %167 : vector<8x32xf32>
    %cst_41 = arith.constant dense<0.000000e+00> : vector<8xf32>
    %169 = vector.multi_reduction <add>, %168, %cst_41 [1] : vector<8x32xf32> to vector<8xf32>
    %170 = vector.shape_cast %169 : vector<8xf32> to vector<8x1xf32>
    %cst_42 = arith.constant 3.200000e+01 : f32
    %171 = vector.broadcast %cst_42 : f32 to vector<8x1xf32>
    %172 = arith.divf %170, %171 : vector<8x1xf32>
    %173 = vector.broadcast %165 : vector<8x1xf32> to vector<8x32xf32>
    %174 = arith.subf %161, %173 : vector<8x32xf32>
    %cst_43 = arith.constant 9.99999974E-6 : f32
    %175 = vector.broadcast %cst_43 : f32 to vector<8x1xf32>
    %176 = arith.addf %172, %175 : vector<8x1xf32>
    %177 = math.rsqrt %176 : vector<8x1xf32>
    %178 = vector.broadcast %177 : vector<8x1xf32> to vector<8x32xf32>
    %179 = arith.mulf %174, %178 : vector<8x32xf32>
    %c0_44 = arith.constant 0 : index
    %c0_45 = arith.constant 0 : index
    %180 = vector.load %arg9[%c0_44, %c0_45] : memref<1x32xf32, #tpu.memory_space<vmem>>, vector<1x32xf32>
    %181 = vector.broadcast %180 : vector<1x32xf32> to vector<8x32xf32>
    %182 = arith.mulf %179, %181 : vector<8x32xf32>
    %c0_46 = arith.constant 0 : index
    %c0_47 = arith.constant 0 : index
    %183 = vector.load %arg10[%c0_46, %c0_47] : memref<1x32xf32, #tpu.memory_space<vmem>>, vector<1x32xf32>
    %184 = vector.broadcast %183 : vector<1x32xf32> to vector<8x32xf32>
    %185 = arith.addf %182, %184 : vector<8x32xf32>
    %186 = arith.truncf %185 : vector<8x32xf32> to vector<8x32xbf16>
    %c0_48 = arith.constant 0 : index
    %c0_49 = arith.constant 0 : index
    %187 = vector.load %arg11[%c0_48, %c0_49] : memref<32x64xbf16, #tpu.memory_space<vmem>>, vector<32x64xbf16>
    %cst_50 = arith.constant dense<0.000000e+00> : vector<8x64xf32>
    %188 = tpu.matmul %186, %187, %cst_50 {dimension_numbers = #tpu.dot_dimension_numbers<[1], [0], [0], [1], [0, 0, 1, 1], [], []>} : vector<8x32xbf16>, vector<32x64xbf16>, vector<8x64xf32> -> vector<8x64xf32>
    %c0_51 = arith.constant 0 : index
    %c0_52 = arith.constant 0 : index
    %189 = vector.load %arg12[%c0_51, %c0_52] : memref<1x64xf32, #tpu.memory_space<vmem>>, vector<1x64xf32>
    %190 = vector.broadcast %189 : vector<1x64xf32> to vector<8x64xf32>
    %191 = arith.addf %188, %190 : vector<8x64xf32>
    %192 = vector.extract_strided_slice %191 {offsets = [0, 0], sizes = [8, 32], strides = [1, 1]} : vector<8x64xf32> to vector<8x32xf32>
    %193 = vector.extract_strided_slice %191 {offsets = [0, 32], sizes = [8, 32], strides = [1, 1]} : vector<8x64xf32> to vector<8x32xf32>
    %cst_53 = arith.constant 5.000000e-01 : f32
    %194 = vector.broadcast %cst_53 : f32 to vector<8x32xf32>
    %195 = arith.mulf %194, %192 : vector<8x32xf32>
    %cst_54 = arith.constant 0.707106769 : f32
    %196 = vector.broadcast %cst_54 : f32 to vector<8x32xf32>
    %197 = arith.mulf %192, %196 : vector<8x32xf32>
    %198 = math.erf %197 : vector<8x32xf32>
    %cst_55 = arith.constant 1.000000e+00 : f32
    %199 = vector.broadcast %cst_55 : f32 to vector<8x32xf32>
    %200 = arith.addf %199, %198 : vector<8x32xf32>
    %201 = arith.mulf %195, %200 : vector<8x32xf32>
    %202 = arith.mulf %201, %193 : vector<8x32xf32>
    %203 = arith.truncf %202 : vector<8x32xf32> to vector<8x32xbf16>
    %c0_56 = arith.constant 0 : index
    %c0_57 = arith.constant 0 : index
    %204 = vector.load %arg13[%c0_56, %c0_57] : memref<32x32xbf16, #tpu.memory_space<vmem>>, vector<32x32xbf16>
    %cst_58 = arith.constant dense<0.000000e+00> : vector<8x32xf32>
    %205 = tpu.matmul %203, %204, %cst_58 {dimension_numbers = #tpu.dot_dimension_numbers<[1], [0], [0], [1], [0, 0, 1, 1], [], []>} : vector<8x32xbf16>, vector<32x32xbf16>, vector<8x32xf32> -> vector<8x32xf32>
    %c0_59 = arith.constant 0 : index
    %c0_60 = arith.constant 0 : index
    %206 = vector.load %arg14[%c0_59, %c0_60] : memref<1x32xf32, #tpu.memory_space<vmem>>, vector<1x32xf32>
    %207 = vector.broadcast %206 : vector<1x32xf32> to vector<8x32xf32>
    %208 = arith.addf %205, %207 : vector<8x32xf32>
    %cst_61 = arith.constant 5.000000e-01 : f32
    %209 = vector.broadcast %cst_61 : f32 to vector<8x32xf32>
    %210 = arith.mulf %209, %208 : vector<8x32xf32>
    %211 = arith.addf %161, %210 : vector<8x32xf32>
    %c0_62 = arith.constant 0 : index
    %c0_63 = arith.constant 0 : index
    %c0_64 = arith.constant 0 : index
    %212 = vector.load %arg15[%c0_62, %c0_63, %c0_64] : memref<1x8x32xf32, #tpu.memory_space<vmem>>, vector<1x8x32xf32>
    %213 = vector.shape_cast %212 : vector<1x8x32xf32> to vector<8x32xf32>
    %214 = vector.shape_cast %211 : vector<8x32xf32> to vector<1x8x32xf32>
    tpu.vector_store %arg15[%c0_62, %c0_63, %c0_64], %214 {strides = array<i32>} : memref<1x8x32xf32, #tpu.memory_space<vmem>>, vector<1x8x32xf32>,
    return
  }
  func.func @transform_0(%arg0: i32, %arg1: i32) -> (i32, i32, i32) {
    %c0_i32 = arith.constant 0 : i32
    %c0_i32_0 = arith.constant 0 : i32
    return %arg0, %arg1, %c0_i32 : i32, i32, i32
  }
  func.func @transform_1(%arg0: i32, %arg1: i32) -> (i32, i32) {
    %c0_i32 = arith.constant 0 : i32
    %c0_i32_0 = arith.constant 0 : i32
    %c0_i32_1 = arith.constant 0 : i32
    return %c0_i32, %c0_i32_0 : i32, i32
  }
  func.func @transform_2(%arg0: i32, %arg1: i32) -> (i32, i32) {
    %c0_i32 = arith.constant 0 : i32
    %c0_i32_0 = arith.constant 0 : i32
    %c0_i32_1 = arith.constant 0 : i32
    return %c0_i32, %c0_i32_0 : i32, i32
  }
  func.func @transform_3(%arg0: i32, %arg1: i32) -> (i32, i32) {
    %c0_i32 = arith.constant 0 : i32
    %c0_i32_0 = arith.constant 0 : i32
    %c0_i32_1 = arith.constant 0 : i32
    return %c0_i32, %c0_i32_0 : i32, i32
  }
  func.func @transform_4(%arg0: i32, %arg1: i32) -> (i32, i32) {
    %c0_i32 = arith.constant 0 : i32
    %c0_i32_0 = arith.constant 0 : i32
    %c0_i32_1 = arith.constant 0 : i32
    return %c0_i32, %c0_i32_0 : i32, i32
  }
  func.func @transform_5(%arg0: i32, %arg1: i32) -> (i32, i32) {
    %c0_i32 = arith.constant 0 : i32
    %c0_i32_0 = arith.constant 0 : i32
    %c0_i32_1 = arith.constant 0 : i32
    return %c0_i32, %c0_i32_0 : i32, i32
  }
  func.func @transform_6(%arg0: i32, %arg1: i32) -> (i32, i32) {
    %c0_i32 = arith.constant 0 : i32
    %c0_i32_0 = arith.constant 0 : i32
    %c0_i32_1 = arith.constant 0 : i32
    return %c0_i32, %c0_i32_0 : i32, i32
  }
  func.func @transform_7(%arg0: i32, %arg1: i32) -> (i32, i32) {
    %c0_i32 = arith.constant 0 : i32
    %c0_i32_0 = arith.constant 0 : i32
    %c0_i32_1 = arith.constant 0 : i32
    return %c0_i32, %c0_i32_0 : i32, i32
  }
  func.func @transform_8(%arg0: i32, %arg1: i32) -> (i32, i32) {
    %c0_i32 = arith.constant 0 : i32
    %c0_i32_0 = arith.constant 0 : i32
    %c0_i32_1 = arith.constant 0 : i32
    return %c0_i32, %c0_i32_0 : i32, i32
  }
  func.func @transform_9(%arg0: i32, %arg1: i32) -> (i32, i32) {
    %c0_i32 = arith.constant 0 : i32
    %c0_i32_0 = arith.constant 0 : i32
    %c0_i32_1 = arith.constant 0 : i32
    return %c0_i32, %c0_i32_0 : i32, i32
  }
  func.func @transform_10(%arg0: i32, %arg1: i32) -> (i32, i32) {
    %c0_i32 = arith.constant 0 : i32
    %c0_i32_0 = arith.constant 0 : i32
    %c0_i32_1 = arith.constant 0 : i32
    return %c0_i32, %c0_i32_0 : i32, i32
  }
  func.func @transform_11(%arg0: i32, %arg1: i32) -> (i32, i32) {
    %c0_i32 = arith.constant 0 : i32
    %c0_i32_0 = arith.constant 0 : i32
    %c0_i32_1 = arith.constant 0 : i32
    return %c0_i32, %c0_i32_0 : i32, i32
  }
  func.func @transform_12(%arg0: i32, %arg1: i32) -> (i32, i32) {
    %c0_i32 = arith.constant 0 : i32
    %c0_i32_0 = arith.constant 0 : i32
    %c0_i32_1 = arith.constant 0 : i32
    return %c0_i32, %c0_i32_0 : i32, i32
  }
  func.func @transform_13(%arg0: i32, %arg1: i32) -> (i32, i32, i32) {
    %c0_i32 = arith.constant 0 : i32
    %c0_i32_0 = arith.constant 0 : i32
    return %arg0, %arg1, %c0_i32 : i32, i32, i32
  }
}

</mosaic_0001>

<bundles_post_ra>
// kernel: tpu_custom_call.1
= control target key start
LH: loop header
LB: loop body
LE: loop exit
PB: predicated region body
PF: predicated region fallthrough
CT: control target
= control target key end

     0   :  { %s1920_s0 = inlined_call_operand.vmem [shape: f32[2,8,32], index: 0, kind: input, shape index: {}]   ;;  %s1921_s1 = inlined_call_operand.vmem [shape: f32[1,32], index: 1, kind: input, shape index: {}]   ;;  %s1922_s2 = inlined_call_operand.vmem [shape: f32[1,32], index: 2, kind: input, shape index: {}]   ;;  %s1923_s3 = inlined_call_operand.vmem [shape: bf16[96,32], index: 3, kind: input, shape index: {}]   ;;  %s1924_s4 = inlined_call_operand.vmem [shape: f32[96,1], index: 4, kind: input, shape index: {}]   ;;  %s1925_s5 = inlined_call_operand.vmem [shape: bf16[32,32], index: 5, kind: input, shape index: {}]   ;;  %s1926_s6 = inlined_call_operand.vmem [shape: f32[1,32], index: 6, kind: input, shape index: {}]   ;;  %s1927_s7 = inlined_call_operand.vmem [shape: f32[1,32], index: 7, kind: input, shape index: {}]   ;;  %s1928_s8 = inlined_call_operand.vmem [shape: f32[1,32], index: 8, kind: input, shape index: {}]   ;;  %s1929_s9 = inlined_call_operand.vmem [shape: bf16[32,64], index: 9, kind: input, shape index: {}]   ;;  %s1930_s10 = inlined_call_operand.vmem [shape: f32[1,64], index: 10, kind: input, shape index: {}]   ;;  %s1931_s11 = inlined_call_operand.vmem [shape: bf16[32,32], index: 11, kind: input, shape index: {}]   ;;  %s1932_s12 = inlined_call_operand.vmem [shape: f32[1,32], index: 12, kind: input, shape index: {}]   ;;  %s1933_s13 = inlined_call_operand.hbm [shape: f32[2,8,32], index: 13, kind: output, shape index: {}]  }
   0x1   :  { %1934 = sst [smem:[#allocation5_spill]] %s1920_s0 }
   0x2   :  { %1935 = sst [smem:[#allocation6_spill]] %s1921_s1 }
   0x3   :  { %1936 = sst [smem:[#allocation7_spill]] %s1922_s2 }
   0x4   :  { %1937 = sst [smem:[#allocation8_spill]] %s1923_s3 }
   0x5   :  { %18 = vsyncpa [#allocation3], 0 }
   0x6   :  { %20 = vsyncpa [#allocation3 + $0x1], 0  ;;  %s1656_s25 = smov 0   ;;  %s1658_s26 = smov 0  }
   0x7   :  { %s1660_s27 = smov 0   ;;  %s1662_s28 = smov 0  }
   0x8   :  { %s1664_s29 = smov 0   ;;  %s1666_s30 = smov 0  }
   0x9 LB: > { %s1312_s14 = sadd.s32 4294967295, %s1579_s30   ;;  %s1313_s15 = sadd.s32 4294967294, %s1579_s30   ;;  %s1579_s30 = sphi %s1666_s30, %s26_s30   ;;  %s1575_s29 = sphi %s1664_s29, %s1948_s29   ;;  %s1571_s28 = sphi %s1662_s28, %s1947_s28   ;;  %s1567_s27 = sphi %s1660_s27, %s1946_s27   ;;  %s1563_s26 = sphi %s1658_s26, %s1945_s26   ;;  %s1559_s25 = sphi %s1656_s25, %s1944_s25  }
   0xa   : > { %s38_s16 = sadd.s32 1, %s1575_s29  ;;  %s327_s17 = sadd.s32 1, %s1567_s27 }
   0xb   : > { %p40_p0 = scmp.ge.s32.totalorder %s38_s16, 2  ;;  %p337_p1 = scmp.ne.s32.totalorder %s1567_s27, %s1563_s26 }
   0xc   : > { %p338_p2 = scmp.eq.s32.totalorder %s1312_s14, 1  ;;  %p343_p3 = scmp.ne.s32.totalorder %s1563_s26, %s1559_s25 }
   0xd   : > { %s1950_s16 = smov (%p40_p0, %s38_s16), 0  ;;  %p344_p5 = scmp.eq.s32.totalorder %s1313_s15, 1 }
   0xe   : > { %p1696_p4 = por %p338_p2, %p337_p1  ;;  %s322_s19 = ssub.s32 %s1575_s29, %s1950_s16 }
   0xf   : > { %p1316_p6 = scmp.ge.s32.totalorder %s1579_s30, 1  ;;  %p325_p7 = scmp.eq.s32.totalorder %s322_s19, 0 }
  0x10   : > { %p1703_p8 = por %p344_p5, %p343_p3  ;;  %p408_p9 = scmp.lt.s32.totalorder %s1579_s30, 3 }
  0x11   : > { %s1709_s21 = scalar_select %p325_p7, %s1567_s27, %s327_s17  }
  0x12   : > { %p409_p10 = pnand %p1316_p6, %p408_p9 }
  0x13   : > { %p454_p11 = scmp.lt.s32.totalorder (!%p409_p10), %s1571_s28, 1  ;;  %s1940_s0 = sld [smem:[#allocation5_spill]] (!%p409_p10) }
  0x14   : > { %412 = sbr.rel (%p409_p10) target bundleno = 1938 (0x792), region = 72  ;;  %s1941_s1 = sld [smem:[#allocation6_spill]] (!%p409_p10) }
  0x15   : > { %s1942_s2 = sld [smem:[#allocation7_spill]] (!%p409_p10) }
  0x16   : > { %s1943_s3 = sld [smem:[#allocation8_spill]] (!%p409_p10) }
  0x19   : > { %s455_s22 = scalar_select %p454_p11, %s1571_s28, 1  ;;  %vm463_vm0 = vcmask 261120   ;;  %v1581_v17 = vmov 0   ;;  %v544_v18 = vld [vmem:[%s1924_s4 + $0x20] sm:$0xff]  ;;  %v546_v19 = vld [vmem:[%s1924_s4 + $0x30] sm:$0xff]  ;;  %v543_v20 = vld [vmem:[%s1924_s4 + $0x18] sm:$0xff] }
  0x1a   : > { %v1319_v11 = vld [vmem:[%s1941_s1] ss:$0 sm:$0xff]  ;;  %1468 = vset.pattern.permute.xlu0 %v1581_v17  ;;  %v547_v21 = vld [vmem:[%s1924_s4 + $0x38] sm:$0xff]  ;;  %v545_v22 = vld [vmem:[%s1924_s4 + $0x28] sm:$0xff]  ;;  %v1582_v43 = vmov 0.0   ;;  %vm742_vm1 = vcmask 64512  }
  0x1b   : > { %s1318_s23 = sshll.u32 %s455_s22, 3  ;;  %v1320_v13 = vld [vmem:[%s1942_s2] ss:$0 sm:$0xff]  ;;  %v542_v24 = vld [vmem:[%s1924_s4 + $0x10] sm:$0xff]  ;;  %v541_v26 = vld [vmem:[%s1924_s4 + $0x8] sm:$0xff]  ;;  %1384 = vmatprep.subr.bf16.mxu1 %v1582_v43  ;;  %vm773_vm2 = vcmask 1040384  }
  0x1c   : > { %s460_s15 = scalar_lea.vmem %s1940_s0, %s1318_s23  ;;  %v1469_v16 = vld [vmem:[%s1943_s3] sm:$0xff]   ;;  %v550_v25 = vld [vmem:[%s1924_s4 + $0x50] sm:$0xff]  ;;  %v549_v28 = vld [vmem:[%s1924_s4 + $0x48] sm:$0xff]  ;;  %vm775_vm3 = vcmask 58368   ;;  %vm831_vm4 = vcmask 1041408   ;;  %vm833_vm5 = vcmask 59392  }
  0x1d   : > { %v1716_v0 = vld [vmem:[%s460_s15] sm:$0xff]  ;;  %1372 = vmatprep.mubr.msk.bf16.mxu0 %vm463_vm0, %v1469_v16  ;;  %v551_v29 = vld [vmem:[%s1924_s4 + $0x58] sm:$0xff]  ;;  %v1470_v36 = vld [vmem:[%s1943_s3 + $0x8] sm:$0xff]   ;;  %vm904_vm6 = vcmask 1042432   ;;  %vm906_vm7 = vcmask 60416   ;;  %vm1583_vm8 = vmmov 0  }
  0x1e   : > { %v464_v1 = vsel %vm463_vm0, %v1716_v0, 0.0  ;;  %v548_v23 = vld [vmem:[%s1924_s4 + $0x40] sm:$0xff]  ;;  %v1471_v37 = vld [vmem:[%s1943_s3 + $0x10] sm:$0xff]   ;;  %v1472_v38 = vld [vmem:[%s1943_s3 + $0x18] sm:$0xff]   ;;  %1388 = vmatprep.mubr.msk.bf16.mxu1 %vm1583_vm8, %v1582_v43  ;;  %s1584_s0 = smov 96   ;;  %s451_s23 = sand.u32 1, %s1563_s26  }
  0x1f   : > { %465 = vadd.xlane.f32.xlu0 %v464_v1  ;;  %v540_v27 = vld [vmem:[%s1924_s4] sm:$0xff]  ;;  %v1474_v40 = vld [vmem:[%s1943_s3 + $0x28] sm:$0xff]   ;;  %s1317_s24 = sshll.u32 %s451_s23, 3  ;;  %s1348_s2 = sshll.u32 %s1571_s28, 7 }
  0x20   : > { %v1473_v39 = vld [vmem:[%s1943_s3 + $0x20] sm:$0xff]   ;;  %v1475_v42 = vld [vmem:[%s1925_s5 + $0x8] sm:$0xff]   ;;  %s453_s15 = scalar_lea.vmem [#allocation2], %s1317_s24  ;;  %s1227_s14 = scalar_lea.sflag [#allocation3], %s451_s23 }
  0x21   : > { %1385 = vmatpush3.bf16.msra.mxu1 %v1475_v42  ;;  %v1476_v44 = vld [vmem:[%s1925_s5] sm:$0xff]   ;;  %s1241_s17 = sshll.u32 %s453_s15, 4  ;;  %s1585_s28 = smov [#allocation2]   ;;  %s1242_s17 = int_to_ptr.vmem [resolvable:$true] %s1241_s17 }
  0x22   : > { %1386 = vmatprep.subr.bf16.mxu1 %v1582_v43  ;;  %s1503_s1 = scalar_lea.vmem %s1242_s17, 128  ;;  %s1507_s24 = sshll.u32 %s1585_s28, 4  ;;  %s1508_s24 = int_to_ptr.vmem [resolvable:$false] %s1507_s24 }
  0x23   : > { %p1504_p12 = scmp.ne.s32.totalorder %s1242_s17, %s1503_s1  ;;  %s1509_s3 = scalar_lea.vmem %s1508_s24, 256 }
  0x24   : > { %p1510_p1 = scmp.lt.s32.totalorder %s1242_s17, %s1508_s24  ;;  %p1511_p2 = scmp.lt.s32.totalorder %s1509_s3, %s1503_s1 }
  0x25   : > { %1387 = vmatpush3.bf16.msra.mxu1 %v1476_v44  ;;  %p1505_p13 = pnand %p1504_p12, %p1696_p4 }
  0x26   : > { %1392 = vmatprep.subr.bf16.mxu1 %v1582_v43  ;;  %p1512_p3 = por %p1511_p2, %p1510_p1 }
  0x27   : > { %p1506_p0 = pneg %p1505_p13 }
  0x29   : > { %p1513_p5 = pnand %p1512_p3, %p1506_p0 }
  0xa8   : > { %v466_v2 = vpop.xlane.xlu0 %465 }
  0xa9   : > { %v468_v3 = vmul.f32 0.03125, %v466_v2 }
  0xab   : > { %v469_v4 = vsub.f32 %v1716_v0, %v468_v3 }
  0xad   : > { %v470_v5 = vmul.f32 %v469_v4, %v469_v4 }
  0xaf   : > { %v471_v6 = vsel %vm463_vm0, %v470_v5, 0.0 }
  0xb0   : > { %472 = vadd.xlane.f32.xlu0 %v471_v6 }
  0xc6   : > { %574 = vperm.xlu0 %1468, %v544_v18  }
  0xca   : > { %584 = vperm.xlu0 %1468, %v546_v19  }
  0xce   : > { %589 = vperm.xlu0 %1468, %v547_v21  }
  0xd2   : > { %594 = vperm.xlu0 %1468, %v548_v23  }
  0xd6   : > { %604 = vperm.xlu0 %1468, %v550_v25  }
 0x139   : > { %v473_v7 = vpop.xlane.xlu0 %472 }
 0x13a   : > { %v474_v8 = vmul.f32 0.03125, %v473_v7 }
 0x13c   : > { %v475_v9 = vadd.f32 1e-05, %v474_v8 }
 0x13e   : > { %1481 = vrsqrt.f32 %v475_v9 }
 0x141   : > { %v575_v48 = vpop.permute.xlu0 %574 }
 0x145   : > { %v585_v53 = vpop.permute.xlu0 %584 }
 0x149   : > { %v590_v3 = vpop.permute.xlu0 %589 }
 0x14b   : > { %v1482_v10 = vpop.eup %1481 }
 0x14c   : > { %v477_v12 = vmul.f32 %v1482_v10, %v469_v4 }
 0x14e   : > { %v485_v14 = vmul.f32 %v1319_v11, %v477_v12 }
 0x150   : > { %v493_v15 = vadd.f32 %v1320_v13, %v485_v14 }
 0x152   : > { %506 = vxpose.xlu1.b32.start.end [1/1] (short) (narrow) %v493_v15, 32 }
 0x170   : > { %1467 = vset.pattern.permute.xlu1 %v1581_v17 }
 0x17c   : > { %569 = vperm.xlu1 %1467, %v543_v20  }
 0x180   : > { %579 = vperm.xlu1 %1467, %v545_v22  }
 0x184   : > { %564 = vperm.xlu1 %1467, %v542_v24  }
 0x188   : > { %559 = vperm.xlu1 %1467, %v541_v26  }
 0x18c   : > { %554 = vperm.xlu1 %1467, %v540_v27  }
 0x190   : > { %599 = vperm.xlu1 %1467, %v549_v28  }
 0x194   : > { %609 = vperm.xlu1 %1467, %v551_v29  }
 0x1ce   : > { %v522_v30 = vpop.trf.xlu1 }
 0x1d2   : > { %v523_v31 = vpop.trf.xlu1 }
 0x1d3   : > { %v538_v35 = vpack.c.bf16 %v523_v31, %v522_v30 }
 0x1d6   : > { %v524_v32 = vpop.trf.xlu1 }
 0x1da   : > { %v525_v33 = vpop.trf.xlu1 }
 0x1db   : > { %v539_v34 = vpack.c.bf16 %v525_v33, %v524_v32 }
 0x1dd   : > { %1368 = vmatprep.subr.bf16.mxu0 %v539_v34 }
 0x1de   : > { %1369 = vmatpush3.bf16.msra.mxu0 %v539_v34 }
 0x1df   : > { %1370 = vmatprep.subr.bf16.mxu0 %v538_v35 }
 0x1e2   : > { %1371 = vmatpush3.bf16.msra.mxu0 %v538_v35 }
 0x1e5   : > { %1373 = vmatmul.mubr.msk.bf16.vlgmr.msra.gmra.mxu0 %vm463_vm0, %v1470_v36 }
 0x1e6   : > { %1376 = vmatprep.mubr.msk.bf16.mxu0 %vm463_vm0, %v1471_v37 }
 0x1ed   : > { %1377 = vmatmul.mubr.msk.bf16.gmra.mxu0 %vm463_vm0, %v1472_v38 }
 0x1ee   : > { %1380 = vmatprep.mubr.msk.bf16.mxu0 %vm463_vm0, %v1473_v39 }
 0x1f5   : > { %1381 = vmatmul.mubr.msk.bf16.gmra.mxu0 %vm463_vm0, %v1474_v40 }
 0x1f7   : > { %v570_v41 = vpop.permute.xlu1 %569 }
 0x1fb   : > { %v580_v45 = vpop.permute.xlu1 %579 }
 0x1ff   : > { %v565_v46 = vpop.permute.xlu1 %564 }
 0x203   : > { %v560_v50 = vpop.permute.xlu1 %559 }
 0x207   : > { %v555_v55 = vpop.permute.xlu1 %554 }
 0x2a5   : > { %v1374_v47 = vpop.f32.mrf.mxu0 }
 0x2a6   : > { %v703_v61 = vadd.f32 %v1374_v47, %v565_v46 }
 0x2a7   : > { %v694_v49 = vpop.f32.mrf.mxu0 }
 0x2a8   : > { %v695_v58 = vadd.f32 %v694_v49, %v555_v55 }
 0x2a9   : > { %v1375_v51 = vpop.f32.mrf.mxu0 }
 0x2aa   : > { %v706_v62 = vadd.f32 %v1375_v51, %v570_v41 }
 0x2ab   : > { %v697_v52 = vpop.f32.mrf.mxu0 }
 0x2ac   : > { %v698_v59 = vadd.f32 %v697_v52, %v560_v50 }
 0x2ad   : > { %v1378_v54 = vpop.f32.mrf.mxu0 }
 0x2ae   : > { %v719_v56 = vadd.f32 %v1378_v54, %v585_v53 }
 0x2af   : > { %v710_v57 = vpop.f32.mrf.mxu0 }
 0x2b0   : > { %v711_v60 = vadd.f32 %v710_v57, %v575_v48  ;;  %v822_v4 = vmul.f32 %v719_v56, %v703_v61  ;;  %v886_v5 = vmul.f32 %v719_v56, %v706_v62 }
 0x2b1   : > { %v1379_v63 = vpop.f32.mrf.mxu0 }
 0x2b2   : > { %v741_v1 = vmul.f32 %v711_v60, %v695_v58  ;;  %v757_v2 = vmul.f32 %v711_v60, %v698_v59  ;;  %v806_v6 = vmul.f32 %v711_v60, %v703_v61  ;;  %v870_v7 = vmul.f32 %v711_v60, %v706_v62 }
 0x2b3   : > { %v713_v8 = vpop.f32.mrf.mxu0  ;;  %v722_v11 = vadd.f32 %v1379_v63, %v590_v3  ;;  %v823_v19 = vsel %vm742_vm1, %v822_v4, 0.0  ;;  %v887_v20 = vsel %vm742_vm1, %v886_v5, 0.0 }
 0x2b4   : > { %v743_v9 = vsel %vm742_vm1, %v741_v1, 0.0  ;;  %v758_v10 = vsel %vm742_vm1, %v757_v2, 0.0  ;;  %v714_v12 = vadd.f32 %v713_v8, %v580_v45  ;;  %v807_v15 = vsel %vm742_vm1, %v806_v6, 0.0 }
 0x2b5   : > { %v744_v13 = vrot.slane %v743_v9, 4  ;;  %v759_v14 = vrot.slane %v758_v10, 4  ;;  %v871_v16 = vsel %vm742_vm1, %v870_v7, 0.0  ;;  %v894_v17 = vmul.f32 %v722_v11, %v706_v62 }
 0x2b6   : > { %v765_v18 = vmul.f32 %v714_v12, %v698_v59  ;;  %v808_v23 = vrot.slane %v807_v15, 4  ;;  %v872_v28 = vrot.slane %v871_v16, 4  ;;  %v824_v29 = vrot.slane %v823_v19, 4 }
 0x2b7   : > { %v745_v21 = vadd.f32 %v744_v13, %v743_v9  ;;  %v760_v22 = vadd.f32 %v759_v14, %v758_v10  ;;  %v895_v24 = vsel %vm742_vm1, %v894_v17, 0.0  ;;  %v888_v30 = vrot.slane %v887_v20, 4 }
 0x2b8   : > { %v766_v25 = vsel %vm742_vm1, %v765_v18, 0.0  ;;  %v896_v33 = vrot.slane %v895_v24, 4  ;;  %v809_v35 = vadd.f32 %v808_v23, %v807_v15  ;;  %v873_v38 = vadd.f32 %v872_v28, %v871_v16 }
 0x2b9   : > { %v746_v26 = vrot.slane %v745_v21, 2  ;;  %v761_v27 = vrot.slane %v760_v22, 2  ;;  %v767_v31 = vrot.slane %v766_v25, 4  ;;  %v825_v39 = vadd.f32 %v824_v29, %v823_v19 }
 0x2ba   : > { %v889_v40 = vadd.f32 %v888_v30, %v887_v20  ;;  %v897_v44 = vadd.f32 %v896_v33, %v895_v24  ;;  %v814_v45 = vmul.f32 %v714_v12, %v703_v61  ;;  %v878_v46 = vmul.f32 %v714_v12, %v706_v62 }
 0x2bb   : > { %v747_v32 = vadd.f32 %v746_v26, %v745_v21  ;;  %v762_v34 = vadd.f32 %v761_v27, %v760_v22  ;;  %v768_v36 = vadd.f32 %v767_v31, %v766_v25  ;;  %v810_v48 = vrot.slane %v809_v35, 2 }
 0x2bc   : > { %v874_v51 = vrot.slane %v873_v38, 2  ;;  %v815_v52 = vsel %vm742_vm1, %v814_v45, 0.0  ;;  %v879_v53 = vsel %vm742_vm1, %v878_v46, 0.0  ;;  %v826_v54 = vrot.slane %v825_v39, 2 }
 0x2bd   : > { %v748_v37 = vrot.slane %v747_v32, 1  ;;  %v769_v41 = vrot.slane %v768_v36, 2  ;;  %v763_v47 = vrot.slane %v762_v34, 1  ;;  %v890_v55 = vrot.slane %v889_v40, 2 }
 0x2be   : > { %v898_v58 = vrot.slane %v897_v44, 2  ;;  %v816_v59 = vrot.slane %v815_v52, 4  ;;  %v880_v60 = vrot.slane %v879_v53, 4  ;;  %v811_v61 = vadd.f32 %v810_v48, %v809_v35 }
 0x2bf   : > { %v749_v42 = vadd.f32 %v748_v37, %v747_v32  ;;  %v770_v49 = vadd.f32 %v769_v41, %v768_v36  ;;  %v764_v63 = vadd.f32 %v763_v47, %v762_v34  ;;  %v875_v1 = vadd.f32 %v874_v51, %v873_v38 }
 0x2c0   : > { %v817_v2 = vadd.f32 %v816_v59, %v815_v52  ;;  %v881_v3 = vadd.f32 %v880_v60, %v879_v53  ;;  %v827_v4 = vadd.f32 %v826_v54, %v825_v39  ;;  %v891_v5 = vadd.f32 %v890_v55, %v889_v40  ;;  %v1815_v53 = vpop.f32.mrf.mxu0 }
 0x2c1   : > { %v750_v50 = vsub.f32 %v749_v42, %v749_v42  ;;  %v771_v56 = vrot.slane %v770_v49, 1  ;;  %v899_v7 = vadd.f32 %v898_v58, %v897_v44  ;;  %v812_v12 = vrot.slane %v811_v61, 1 }
 0x2c2   : > { %v818_v9 = vrot.slane %v817_v2, 2  ;;  %v882_v10 = vrot.slane %v881_v3, 2  ;;  %v876_v13 = vrot.slane %v875_v1, 1  ;;  %v828_v16 = vrot.slane %v827_v4, 1  ;;  %v726_v58 = vpop.f32.mrf.mxu0 }
 0x2c3   : > { %v751_v57 = vmul.f32 1.442695, %v750_v50  ;;  %v772_v62 = vadd.f32 %v771_v56, %v770_v49  ;;  %v892_v17 = vrot.slane %v891_v5, 1  ;;  %v900_v19 = vrot.slane %v899_v7, 1 }
 0x2c4   : > { %v819_v14 = vadd.f32 %v818_v9, %v817_v2  ;;  %v883_v15 = vadd.f32 %v882_v10, %v881_v3  ;;  %v813_v23 = vadd.f32 %v812_v12, %v811_v61  ;;  %v877_v24 = vadd.f32 %v876_v13, %v875_v1 }
 0x2c5   : > { %1483 = vpow2.f32 %v751_v57  ;;  %v774_v6 = vsel %vm773_vm2, %v764_v63, %v772_v62  ;;  %v829_v27 = vadd.f32 %v828_v16, %v827_v4  ;;  %v893_v28 = vadd.f32 %v892_v17, %v891_v5  ;;  %v595_v63 = vpop.permute.xlu0 %594 }
 0x2c6   : > { %v776_v8 = vsel %vm775_vm3, %v774_v6, -inf  ;;  %v820_v20 = vrot.slane %v819_v14, 1  ;;  %v884_v21 = vrot.slane %v883_v15, 1  ;;  %v901_v30 = vadd.f32 %v900_v19, %v899_v7 }
 0x2c7   : > { %v777_v11 = vrot.slane %v776_v8, 4  ;;  %v1817_v1 = vadd.f32 %v726_v58, %v595_v63 }
 0x2c8   : > { %v821_v25 = vadd.f32 %v820_v20, %v819_v14  ;;  %v885_v26 = vadd.f32 %v884_v21, %v883_v15 }
 0x2c9   : > { %v778_v18 = vmax.f32 %v776_v8, %v777_v11 }
 0x2ca   : > { %v830_v31 = vsel %vm773_vm2, %v813_v23, %v821_v25  ;;  %v902_v32 = vsel %vm773_vm2, %v877_v24, %v885_v26  ;;  %v795_v23 = vlaneseq }
 0x2cb   : > { %v779_v22 = vrot.slane %v778_v18, 2  ;;  %v832_v34 = vsel %vm831_vm4, %v830_v31, %v829_v27  ;;  %v903_v35 = vsel %vm831_vm4, %v902_v32, %v893_v28 }
 0x2cc   : > { %v834_v36 = vsel %vm833_vm5, %v832_v34, -inf  ;;  %v905_v37 = vsel %vm904_vm6, %v903_v35, %v901_v30  ;;  %v796_v27 = vshrl.u32 %v795_v23, 7  ;;  %v1383_v30 = vpop.f32.mrf.mxu0 }
 0x2cd   : > { %v780_v29 = vmax.f32 %v778_v18, %v779_v22  ;;  %v835_v40 = vrot.slane %v834_v36, 4  ;;  %v907_v41 = vsel %vm906_vm7, %v905_v37, -inf }
 0x2ce   : > { %v908_v42 = vrot.slane %v907_v41, 4  ;;  %v797_v31 = vsub.s32 0, %v796_v27  ;;  %v802_v32 = vsub.s32 1, %v796_v27 }
 0x2cf   : > { %v781_v33 = vrot.slane %v780_v29, 1  ;;  %v836_v45 = vmax.f32 %v834_v36, %v835_v40  ;;  %v600_v36 = vpop.permute.xlu1 %599 }
 0x2d0   : > { %v909_v46 = vmax.f32 %v907_v41, %v908_v42 }
 0x2d1   : > { %v782_v39 = vmax.f32 %v780_v29, %v781_v33  ;;  %v837_v48 = vrot.slane %v836_v45, 2 }
 0x2d2   : > { %v1484_v38 = vpop.eup %1483  ;;  %v910_v49 = vrot.slane %v909_v46, 2 }
 0x2d3   : > { %1485 = vrcp.f32 %v1484_v38  ;;  %v783_v44 = vsub.f32 %v774_v6, %v782_v39  ;;  %v838_v50 = vmax.f32 %v836_v45, %v837_v48 }
 0x2d4   : > { %v911_v51 = vmax.f32 %v909_v46, %v910_v49 }
 0x2d5   : > { %v784_v47 = vmul.f32 1.442695, %v783_v44  ;;  %v839_v52 = vrot.slane %v838_v50, 1  ;;  %v866_v44 = vsub.s32 2, %v796_v27 }
 0x2d6   : > { %v912_v54 = vrot.slane %v911_v51, 1 }
 0x2d7   : > { %1487 = vpow2.f32 %v784_v47  ;;  %v840_v55 = vmax.f32 %v838_v50, %v839_v52 }
 0x2d8   : > { %v913_v56 = vmax.f32 %v911_v51, %v912_v54  ;;  %v945_v51 = vsub.s32 3, %v796_v27  ;;  %v605_v54 = vpop.permute.xlu0 %604 }
 0x2d9   : > { %v841_v57 = vsub.f32 %v832_v34, %v840_v55  ;;  %v729_v34 = vpop.f32.mrf.mxu0  ;;  %v735_v58 = vadd.f32 %v1815_v53, %v605_v54  ;;  %v1343_v54 = vld [vmem:[%s1932_s12] ss:$0 sm:$0xff] }
 0x2da   : > { %v914_v59 = vsub.f32 %v905_v37, %v913_v56 }
 0x2db   : > { %v842_v61 = vmul.f32 1.442695, %v841_v57 }
 0x2dc   : > { %v915_v62 = vmul.f32 1.442695, %v914_v59 }
 0x2dd   : > { %1489 = vpow2.f32 %v842_v61 }
 0x2de   : > { %1491 = vpow2.f32 %v915_v62 }
 0x2e0   : > { %v1486_v60 = vpop.eup %1485 }
 0x2e1   : > { %v755_v2 = vmul.f32 %v1486_v60, %v1484_v38  ;;  %v730_v38 = vadd.f32 %v729_v34, %v600_v36 }
 0x2e3   : > { %v756_v3 = vmul.f32 %v755_v2, %v1817_v1 }
 0x2e4   : > { %v1488_v4 = vpop.eup %1487 }
 0x2e5   : > { %949 = vxpose.xlu0.b32.start [1/4] (short) (narrow) %v756_v3, 8  ;;  %v786_v5 = vsel %vm775_vm3, %v1488_v4, 0.0 }
 0x2e6   : > { %v787_v6 = vrot.slane %v786_v5, 4 }
 0x2e8   : > { %v788_v7 = vadd.f32 %v787_v6, %v786_v5 }
 0x2ea   : > { %v789_v8 = vrot.slane %v788_v7, 2  ;;  %v1490_v10 = vpop.eup %1489 }
 0x2eb   : > { %v1492_v12 = vpop.eup %1491  ;;  %v844_v13 = vsel %vm833_vm5, %v1490_v10, 0.0 }
 0x2ec   : > { %v790_v9 = vadd.f32 %v789_v8, %v788_v7  ;;  %v845_v15 = vrot.slane %v844_v13, 4  ;;  %v917_v16 = vsel %vm906_vm7, %v1492_v12, 0.0 }
 0x2ed   : > { %v918_v17 = vrot.slane %v917_v16, 4 }
 0x2ee   : > { %v791_v11 = vrot.slane %v790_v9, 1  ;;  %v846_v18 = vadd.f32 %v845_v15, %v844_v13 }
 0x2ef   : > { %v919_v19 = vadd.f32 %v918_v17, %v917_v16 }
 0x2f0   : > { %v792_v14 = vadd.f32 %v791_v11, %v790_v9  ;;  %v847_v20 = vrot.slane %v846_v18, 2 }
 0x2f1   : > { %v920_v21 = vrot.slane %v919_v19, 2 }
 0x2f2   : > { %1493 = vrcp.f32 %v792_v14  ;;  %v848_v22 = vadd.f32 %v847_v20, %v846_v18 }
 0x2f3   : > { %v921_v24 = vadd.f32 %v920_v21, %v919_v19 }
 0x2f4   : > { %v849_v25 = vrot.slane %v848_v22, 1 }
 0x2f5   : > { %v922_v26 = vrot.slane %v921_v24, 1 }
 0x2f6   : > { %v850_v28 = vadd.f32 %v849_v25, %v848_v22 }
 0x2f7   : > { %v923_v29 = vadd.f32 %v922_v26, %v921_v24  ;;  %v1477_v26 = vld [vmem:[%s1929_s9 + $0x8] sm:$0xff]  }
 0x2f8   : > { %1495 = vrcp.f32 %v850_v28 }
 0x2f9   : > { %1497 = vrcp.f32 %v923_v29 }
 0x2ff   : > { %v1494_v33 = vpop.eup %1493 }
 0x300   : > { %v794_v35 = vmul.f32 %v1494_v33, %v1488_v4  ;;  %v610_v4 = vpop.permute.xlu1 %609  ;;  %v1338_v33 = vld [vmem:[%s1928_s8] ss:$0 sm:$0xff] }
 0x301   : > { %v738_v7 = vadd.f32 %v1383_v30, %v610_v4 }
 0x302   : > { %v798_v37 = vrot.slane %v794_v35, %v797_v31  ;;  %v803_v39 = vrot.slane %v794_v35, %v802_v32 }
 0x304   : > { %v799_v40 = vmul.f32 %v798_v37, %v1817_v1  ;;  %v804_v41 = vmul.f32 %v803_v39, %v730_v38  ;;  %v1479_v37 = vld [vmem:[%s1931_s11 + $0x8] sm:$0xff]   ;;  %v1339_v39 = vld [vmem:[%s1930_s10] ss:$0 sm:$0xff] }
 0x305   : > { %v1496_v45 = vpop.eup %1495 }
 0x306   : > { %v805_v42 = vadd.f32 %v804_v41, %v799_v40  ;;  %v1498_v46 = vpop.eup %1497  ;;  %v852_v47 = vmul.f32 %v1496_v45, %v1490_v10 }
 0x307   : > { %v925_v48 = vmul.f32 %v1498_v46, %v1492_v12 }
 0x308   : > { %950 = vxpose.xlu0.b32.cont [2/4] (short) (narrow) %v805_v42, 8  ;;  %v867_v49 = vrot.slane %v852_v47, %v866_v44  ;;  %v856_v50 = vrot.slane %v852_v47, %v797_v31  ;;  %v861_v52 = vrot.slane %v852_v47, %v802_v32 }
 0x309   : > { %v940_v55 = vrot.slane %v925_v48, %v866_v44  ;;  %v929_v56 = vrot.slane %v925_v48, %v797_v31  ;;  %v934_v57 = vrot.slane %v925_v48, %v802_v32  ;;  %v946_v2 = vrot.slane %v925_v48, %v945_v51  ;;  %v1337_v31 = vld [vmem:[%s1927_s7] ss:$0 sm:$0xff] }
 0x30a   : > { %v857_v59 = vmul.f32 %v856_v50, %v1817_v1  ;;  %v862_v60 = vmul.f32 %v861_v52, %v730_v38  ;;  %v868_v62 = vmul.f32 %v867_v49, %v735_v58 }
 0x30b   : > { %v930_v63 = vmul.f32 %v929_v56, %v1817_v1  ;;  %v935_v61 = vmul.f32 %v934_v57, %v730_v38  ;;  %v941_v5 = vmul.f32 %v940_v55, %v735_v58  ;;  %v947_v10 = vmul.f32 %v946_v2, %v738_v7  ;;  %v1333_v1 = vld [vmem:[%s1926_s6] ss:$0 sm:$0xff] }
 0x30c   : > { %v863_v3 = vadd.f32 %v862_v60, %v857_v59  ;;  %v1480_v38 = vld [vmem:[%s1931_s11] sm:$0xff]  }
 0x30d   : > { %v936_v6 = vadd.f32 %v935_v61, %v930_v63 }
 0x30e   : > { %v869_v8 = vadd.f32 %v868_v62, %v863_v3 }
 0x30f   : > { %v942_v9 = vadd.f32 %v941_v5, %v936_v6 }
 0x310   : > { %951 = vxpose.xlu0.b32.cont [3/4] (short) (narrow) %v869_v8, 8 }
 0x311   : > { %v948_v11 = vadd.f32 %v947_v10, %v942_v9 }
 0x314   : > { %952 = vxpose.xlu0.b32.end [4/4] (short) (narrow) %v948_v11, 8 }
 0x384   : > { %v965_v53 = vpop.trf.xlu0 }
 0x385   : > { %v981_v12 = vpack.c.bf16 %v965_v53, %v965_v53 }
 0x387   : > { %1389 = vmatmul.mubr.msk.bf16.vlgmr.msra.gmra.mxu1 %vm463_vm0, %v981_v12 }
 0x388   : > { %1396 = vmatprep.mubr.msk.bf16.mxu1 %vm1583_vm8, %v1582_v43  ;;  %1393 = vmatpush3.bf16.msra.mxu1 %v1477_v26 }
 0x389   : > { %1394 = vmatprep.subr.bf16.mxu1 %v1582_v43 }
 0x447   : > { %v1042_v13 = vpop.f32.mrf.mxu1 }
 0x448   : > { %v1043_v14 = vadd.f32 %v1333_v1, %v1042_v13 }
 0x449   : > { %v1390_v15 = vpop.f32.mrf.mxu1 }
 0x44a   : > { %v1048_v16 = vmul.f32 0.5, %v1043_v14 }
 0x44b   : > { %v1045_v17 = vpop.f32.mrf.mxu1 }
 0x44c   : > { %v1836_v18 = vadd.f32 %v1048_v16, %v1716_v0  ;;  %v1478_v0 = vld [vmem:[%s1929_s9] sm:$0xff]  }
 0x44d   : > { %v1391_v19 = vpop.f32.mrf.mxu1  ;;  %1395 = vmatpush3.bf16.msra.mxu1 %v1478_v0 }
 0x44e   : > { %v1050_v20 = vsel %vm463_vm0, %v1836_v18, 0.0  ;;  %1400 = vmatprep.subr.bf16.mxu1 %v1582_v43 }
 0x44f   : > { %1051 = vadd.xlane.f32.xlu1 %v1050_v20 }
 0x4d8   : > { %v1052_v21 = vpop.xlane.xlu1 %1051 }
 0x4d9   : > { %v1053_v22 = vmul.f32 0.03125, %v1052_v21 }
 0x4db   : > { %v1054_v23 = vsub.f32 %v1836_v18, %v1053_v22 }
 0x4dd   : > { %v1055_v24 = vmul.f32 %v1054_v23, %v1054_v23 }
 0x4df   : > { %v1056_v25 = vsel %vm463_vm0, %v1055_v24, 0.0 }
 0x4e0   : > { %1057 = vadd.xlane.f32.xlu1 %v1056_v25 }
 0x569   : > { %v1058_v27 = vpop.xlane.xlu1 %1057 }
 0x56a   : > { %v1059_v28 = vmul.f32 0.03125, %v1058_v27 }
 0x56c   : > { %v1060_v29 = vadd.f32 1e-05, %v1059_v28 }
 0x56e   : > { %1499 = vrsqrt.f32 %v1060_v29 }
 0x57b   : > { %v1500_v30 = vpop.eup %1499 }
 0x57c   : > { %v1062_v32 = vmul.f32 %v1500_v30, %v1054_v23 }
 0x57e   : > { %v1070_v34 = vmul.f32 %v1337_v31, %v1062_v32 }
 0x580   : > { %v1078_v35 = vadd.f32 %v1338_v33, %v1070_v34 }
 0x582   : > { %v1079_v36 = vpack.c.bf16 %v1078_v35, %v1078_v35 }
 0x584   : > { %1397 = vmatmul.mubr.msk.bf16.vlgmr.msra.gmra.mxu1 %vm463_vm0, %v1079_v36 }
 0x585   : > { %1404 = vmatprep.mubr.msk.bf16.mxu1 %vm1583_vm8, %v1582_v43  ;;  %1401 = vmatpush3.bf16.msra.mxu1 %v1479_v37 }
 0x586   : > { %1402 = vmatprep.subr.bf16.mxu1 %v1582_v43 }
 0x589   : > { %1403 = vmatpush3.bf16.msra.mxu1 %v1480_v38 }
 0x644   : > { %v1140_v40 = vpop.f32.mrf.mxu1 }
 0x645   : > { %v1141_v41 = vadd.f32 %v1339_v39, %v1140_v40 }
 0x646   : > { %v1398_v42 = vpop.f32.mrf.mxu1 }
 0x647   : > { %1152 = vrot.lane.b32.xlu0 %v1141_v41, %s1584_s0  ;;  %v1147_v46 = vmul.f32 0.70710677, %v1141_v41  ;;  %v1146_v48 = vmul.f32 0.5, %v1141_v41  ;;  %s1879_s0 = scalar_lea.hbm %s1933_s13, %s1348_s2 }
 0x648   : > { %v1143_v44 = vpop.f32.mrf.mxu1 }
 0x649   : > { %1501 = verf.f32 %v1147_v46 }
 0x64a   : > { %v1399_v45 = vpop.f32.mrf.mxu1 }
 0x656   : > { %v1502_v43 = vpop.eup %1501 }
 0x657   : > { %v1149_v47 = vadd.f32 1.0, %v1502_v43 }
 0x659   : > { %v1150_v49 = vmul.f32 %v1149_v47, %v1146_v48 }
 0x6b9   : > { %v1153_v50 = vpop.permute.xlu0 %1152 }
 0x6ba   : > { %v1155_v51 = vmul.f32 %v1153_v50, %v1150_v49 }
 0x6bc   : > { %v1156_v52 = vpack.c.bf16 %v1155_v51, %v1155_v51 }
 0x6be   : > { %1405 = vmatmul.mubr.msk.bf16.vlgmr.msra.gmra.mxu1 %vm463_vm0, %v1156_v52 }
 0x77e   : > { %v1217_v55 = vpop.f32.mrf.mxu1 }
 0x77f   : > { %v1218_v56 = vadd.f32 %v1343_v54, %v1217_v55 }
 0x780   : > { %v1406_v57 = vpop.f32.mrf.mxu1 }
 0x781   : > { %v1223_v58 = vmul.f32 0.5, %v1218_v56 }
 0x782   : > { %v1220_v59 = vpop.f32.mrf.mxu1 }
 0x783   : > { %v1224_v60 = vadd.f32 %v1223_v58, %v1836_v18 }
 0x784   : > { %v1407_v63 = vpop.f32.mrf.mxu1 }
 0x785   : > { %1225 = vst.msk [vmem:[%s453_s15] sm:$0xff] %vm463_vm0, %v1224_v60 }
 0x786   : > { %1516 = shalt.err (!%p1513_p5)
}
 0x787   : > { %s1517_s2 = scalar_lea.hbm %s1879_s0, 128  ;;  %s1521_s19 = scalar_lea.hbm %s1933_s13, 256 }
 0x788   : > { %p1518_p6 = scmp.ne.s32.totalorder %s1879_s0, %s1517_s2  ;;  %p1522_p10 = scmp.lt.s32.totalorder %s1879_s0, %s1933_s13 }
 0x789   : > { %p1523_p11 = scmp.lt.s32.totalorder %s1521_s19, %s1517_s2 }
 0x78a   : > { %p1519_p7 = pnand %p1518_p6, %p1696_p4 }
 0x78b   : > { %p1524_p12 = por %p1523_p11, %p1522_p10 }
 0x78c   : > { %p1520_p9 = pneg %p1519_p7 }
 0x78e   : > { %p1525_p13 = pnand %p1524_p12, %p1520_p9 }
 0x790   : > { %1528 = shalt.err (!%p1525_p13)
}
 0x791   : > { %1408 = dma.vmem_to_hbm [thread:$0]  (%p1696_p4), %s1242_s17, 128, %s1879_s0, %s1227_s14  }
 0x792 PF: > { %p1414_p0 = scmp.ge.s32.totalorder %s1579_s30, 2  ;;  %s1253_s3 = sand.u32 1, %s1559_s25  }
 0x793   : > { %s1254_s1 = scalar_lea.sflag [#allocation3], %s1253_s3 }
 0x794   : > { %p1411_p1 = pnand %p1414_p0, %p1703_p8 }
 0x796   : > { %p1412_p2 = pneg %p1411_p1 }
 0x798   : > { %1554 = dma.done.wait (%p1412_p2), %s1254_s1, 128  }
 0x799   : > { %1556 = vsyncadd (%p1412_p2), %s1254_s1, 4294967168  ;;  %s26_s30 = sadd.s32 1, %s1579_s30   ;;  %s1944_s25 = smov %s1563_s26 }
 0x79a   : > { %p23_p3 = scmp.ge.s32.totalorder %s26_s30, 4   ;;  %s1945_s26 = smov %s1567_s27 }
 0x79b   : > { %s1946_s27 = smov %s1709_s21  ;;  %s1947_s28 = smov %s1575_s29 }
 0x79c   : > { %s1948_s29 = smov %s1950_s16  ;;  %25 = sbr.rel (!%p23_p3) target bundleno = 9 (0x9), region = 107 }
 0x7a1   :  { %1259 = vsyncpa [#allocation3], 1 }
 0x7a2   :  { %1261 = vsyncpa [#allocation3 + $0x1], 1 }

</bundles_post_ra>
